<compile_context>
chip_gen: v7x
topology: tpu7x:2x2x1
jax: 0.10.0
libtpu: 0.0.40
codegen_flags: <defaults>
</compile_context>

<pallas_src>
import functools

import jax
import jax.numpy as jnp
from jax.experimental import pallas as pl
from jax.experimental.pallas import tpu as pltpu


def _round_up(n, m):
    return ((n + m - 1) // m) * m


# -----------------------------------------------------------------------------
# Fused Pallas kernel
# -----------------------------------------------------------------------------
def _fused_cnn_kernel(patches_ref, wc_ref, bc_ref, w1_ref, mask_ref, s_ref,
                      r_ref, b1_ref, w2_ref, b2_ref, o_ref, *, bb, ppad):
    """One batch-block per program; everything lives in VMEM.

    patches_ref: [K, bb*Ppad]   im2col patches, lanes are b-major then p.
    wc_ref:      [CO, K]        conv weight (OIHW flattened), pre-scaled 1/255.
    bc_ref:      [CO, 1]        conv bias.
    w1_ref:      [Ppad, CO*H]   fc1 weight: row p, column co*H + h (padded rows zero).
    mask_ref:    [CO, CO*H]     0/1 block-diagonal mask (keeps co_row == co_col).
    s_ref:       [CO*H, H]      column folder: tile of eye(H) (sums the co blocks).
    r_ref:       [bb, bb*CO]    row folder: sums the CO rows belonging to each b.
    b1_ref:      [1, H], w2_ref: [H, H] (pre-transposed), b2_ref: [1, H]
    o_ref:       [bb, H]
    """
    # ---- conv + ReLU: ONE MXU matmul over the whole batch block ----
    conv = jnp.dot(wc_ref[...], patches_ref[...],
                   preferred_element_type=jnp.float32)            # [CO, bb*Ppad]
    conv = jnp.maximum(conv + bc_ref[...], 0.0)

    # ---- regroup to [bb*CO, Ppad]: 256-lane (vreg-aligned) slices, no relayout
    conv2 = jnp.concatenate(
        [conv[:, b * ppad:(b + 1) * ppad] for b in range(bb)], axis=0)

    # ---- fc1: ONE big contraction over Ppad, then block-diagonal fold ----
    prod = jnp.dot(conv2, w1_ref[...],
                   preferred_element_type=jnp.float32)            # [bb*CO, CO*H]
    mask = jnp.concatenate([mask_ref[...]] * bb, axis=0)          # [bb*CO, CO*H]
    colfold = jnp.dot(prod * mask, s_ref[...],
                      preferred_element_type=jnp.float32)         # [bb*CO, H]
    h1 = jnp.dot(r_ref[...], colfold,
                 preferred_element_type=jnp.float32)              # [bb, H]
    h1 = jnp.maximum(h1 + b1_ref[...], 0.0)

    # ---- fc2 + ReLU (batch on the MXU M axis); only [bb, H] hits HBM ----
    h2 = jnp.dot(h1, w2_ref[...], preferred_element_type=jnp.float32)
    o_ref[...] = jnp.maximum(h2 + b2_ref[...], 0.0)


# -----------------------------------------------------------------------------
# Host-side glue
# -----------------------------------------------------------------------------
def _im2col_padded(x, kh, kw, ppad):
    """x: [B,C,H,W] -> patches [K, B*Ppad]; K=C*KH*KW (c,kh,kw order),
    lanes b-major then p (= oh*OW + ow), zero-padded from P to Ppad."""
    B, C, H, W = x.shape
    OH, OW = H - kh + 1, W - kw + 1
    P = OH * OW
    K = C * kh * kw
    cols = []
    for c in range(C):
        for i in range(kh):
            for j in range(kw):
                cols.append(x[:, c, i:i + OH, j:j + OW].reshape(B, P))
    pat = jnp.stack(cols, axis=1)                          # [B, K, P]
    pat = jnp.pad(pat, ((0, 0), (0, 0), (0, ppad - P)))    # [B, K, Ppad]
    return pat.transpose(1, 0, 2).reshape(K, B * ppad)     # [K, B*Ppad]


def prepare_params(params):
    """One-time (outside jit) weight re-layout: folds 1/255 into the conv
    weight, builds the lane-padded fc1 weight + fold/selector constants."""
    conv_w, conv_b, fc1_w, fc1_b, fc2_w, fc2_b = params
    CO, C, KH, KW = conv_w.shape
    hidden, F = fc1_w.shape
    P = F // CO
    Ppad = _round_up(P, 128)
    K = C * KH * KW

    wc = conv_w.reshape(CO, K) * (1.0 / 255.0)             # [CO, K]
    bc = conv_b.reshape(CO, 1)

    # fc1 weight -> [Ppad, CO*H]; row p, column co*H + h; padded rows are zero
    w1 = fc1_w.reshape(hidden, CO, P).transpose(2, 1, 0)   # [P, CO, H]
    w1 = jnp.pad(w1, ((0, Ppad - P), (0, 0), (0, 0)))
    w1big = w1.reshape(Ppad, CO * hidden)

    # block-diagonal mask [CO, CO*H] and column folder S = tile(eye(H)) [CO*H, H]
    col_co = jnp.repeat(jnp.arange(CO), hidden)            # [CO*H]
    dmask = (jnp.arange(CO)[:, None] == col_co[None, :]).astype(jnp.float32)
    smat = jnp.tile(jnp.eye(hidden, dtype=jnp.float32), (CO, 1))

    b1 = fc1_b.reshape(1, hidden)
    w2 = fc2_w.T                                           # [H_in, H_out]
    b2 = fc2_b.reshape(1, hidden)
    return wc, bc, w1big, dmask, smat, b1, w2, b2


@functools.partial(jax.jit, static_argnames=("kernel_size", "stride"))
def cnn_layer_forward(x, prepped, kernel_size=3, stride=1):
    assert stride == 1, "reference module is used with stride=1"
    wc, bc, w1big, dmask, smat, b1, w2, b2 = prepped
    B, C, Himg, Wimg = x.shape
    CO, K = wc.shape
    hidden = b1.shape[1]
    OH, OW = Himg - kernel_size + 1, Wimg - kernel_size + 1
    Ppad = _round_up(OH * OW, 128)
    assert w1big.shape[0] == Ppad and K == C * kernel_size * kernel_size

    # batch block: whole batch in one program when small; 8-row blocks else
    bb = B if B <= 8 else 8
    assert B % bb == 0, "batch must be a multiple of 8 when > 8"
    nb = B // bb

    # TODO(synk): im2col still runs as a host-side XLA producer (small tensor).
    patches2d = _im2col_padded(x, kernel_size, kernel_size, Ppad)   # [K, B*Ppad]
    rmat = jnp.repeat(jnp.eye(bb, dtype=jnp.float32), CO, axis=1)   # [bb, bb*CO]

    kernel = functools.partial(_fused_cnn_kernel, bb=bb, ppad=Ppad)
    const = lambda i: (0, 0)   # weights: same block every step -> DMA'd once

    out = pl.pallas_call(
        kernel,
        out_shape=jax.ShapeDtypeStruct((B, hidden), jnp.float32),
        grid=(nb,),
        in_specs=[
            pl.BlockSpec((K, bb * Ppad), lambda i: (0, i)),      # patches
            pl.BlockSpec((CO, K), const),                        # wc
            pl.BlockSpec((CO, 1), const),                        # bc
            pl.BlockSpec((Ppad, CO * hidden), const),            # w1big
            pl.BlockSpec((CO, CO * hidden), const),              # dmask
            pl.BlockSpec((CO * hidden, hidden), const),          # smat
            pl.BlockSpec((bb, bb * CO), const),                  # rmat
            pl.BlockSpec((1, hidden), const),                    # b1
            pl.BlockSpec((hidden, hidden), const),               # w2
            pl.BlockSpec((1, hidden), const),                    # b2
        ],
        out_specs=pl.BlockSpec((bb, hidden), lambda i: (i, 0)),
        compiler_params=pltpu.CompilerParams(
            dimension_semantics=("parallel",),
            vmem_limit_bytes=32 * 1024 * 1024),
    )(patches2d, wc, bc, w1big, dmask, smat, rmat, b1, w2, b2)
    return out


# -----------------------------------------------------------------------------
# Deterministic parameter construction (synthetic init, PyTorch shapes)
# -----------------------------------------------------------------------------
def make_params(key, in_ch, H, W, hidden, kernel_size=3, stride=1):
    CO = hidden // 2
    OH, OW = H - kernel_size + stride, W - kernel_size + stride
    F = CO * OH * OW
    k = jax.random.split(key, 4)
    conv_w = jax.random.normal(k[0], (CO, in_ch, kernel_size, kernel_size),
                               jnp.float32) * 0.05
    conv_b = jnp.zeros((CO,), jnp.float32)
    fc1_w = jax.random.normal(k[1], (hidden, F), jnp.float32) * 0.02
    fc1_b = jnp.zeros((hidden,), jnp.float32)
    fc2_w = jax.random.normal(k[2], (hidden, hidden), jnp.float32) * 0.1
    fc2_b = jnp.zeros((hidden,), jnp.float32)
    return (conv_w, conv_b, fc1_w, fc1_b, fc2_w, fc2_b)


def reference_forward(x, params):
    """Pure-JAX reference mirroring the PyTorch module (use_ReLU=True)."""
    conv_w, conv_b, fc1_w, fc1_b, fc2_w, fc2_b = params
    xs = x / 255.0
    y = jax.lax.conv_general_dilated(
        xs, conv_w, window_strides=(1, 1), padding="VALID",
        dimension_numbers=("NCHW", "OIHW", "NCHW")) + conv_b[None, :, None, None]
    y = jnp.maximum(y, 0.0)
    flat = y.reshape(y.shape[0], -1)
    h1 = jnp.maximum(flat @ fc1_w.T + fc1_b, 0.0)
    return jnp.maximum(h1 @ fc2_w.T + fc2_b, 0.0)


if __name__ == "__main__":
    # obs_shape = (4, 16, 16), hidden_size = 32, kernel_size = 3, stride = 1
    B, C, H, W = 2, 4, 16, 16
    hidden = 32

    key = jax.random.PRNGKey(0)
    kx, kp = jax.random.split(key)
    x = jax.random.uniform(kx, (B, C, H, W), jnp.float32, 0.0, 255.0)
    params = make_params(kp, C, H, W, hidden)
    prepped = prepare_params(params)   # one-time weight re-layout (outside jit)

    out = cnn_layer_forward(x, prepped)
    out = jax.block_until_ready(out)

    ref = reference_forward(x, params)
    assert out.shape == (B, hidden)
    assert jnp.allclose(out, ref, rtol=1e-4, atol=1e-4), "mismatch vs reference"

    print("KERNEL_OK")
</pallas_src>

<mosaic_0001>
module attributes {stable_mosaic.version = 11 : i64} {
  func.func @_fused_cnn_kernel(%arg0: i32, %arg1: memref<36x512xf32, #tpu.memory_space<vmem>>, %arg2: memref<16x36xf32, #tpu.memory_space<vmem>>, %arg3: memref<16x1xf32, #tpu.memory_space<vmem>>, %arg4: memref<256x512xf32, #tpu.memory_space<vmem>>, %arg5: memref<16x512xf32, #tpu.memory_space<vmem>>, %arg6: memref<512x32xf32, #tpu.memory_space<vmem>>, %arg7: memref<2x32xf32, #tpu.memory_space<vmem>>, %arg8: memref<1x32xf32, #tpu.memory_space<vmem>>, %arg9: memref<32x32xf32, #tpu.memory_space<vmem>>, %arg10: memref<1x32xf32, #tpu.memory_space<vmem>>, %arg11: memref<2x32xf32, #tpu.memory_space<vmem>>) attributes {dimension_semantics = [#tpu.dimension_semantics<parallel>], iteration_bounds = array<i64: 1>, scalar_prefetch = 0 : i64, scratch_operands = 0 : i64, tpu.core_type = #tpu.core_type<tc>, window_params = [{transform_indices = @transform_0, window_bounds = array<i64: 36, 512>}, {pipeline_mode = #tpu.pipeline_mode<synchronous>, transform_indices = @transform_1, window_bounds = array<i64: 16, 36>}, {pipeline_mode = #tpu.pipeline_mode<synchronous>, transform_indices = @transform_2, window_bounds = array<i64: 16, 1>}, {pipeline_mode = #tpu.pipeline_mode<synchronous>, transform_indices = @transform_3, window_bounds = array<i64: 256, 512>}, {pipeline_mode = #tpu.pipeline_mode<synchronous>, transform_indices = @transform_4, window_bounds = array<i64: 16, 512>}, {pipeline_mode = #tpu.pipeline_mode<synchronous>, transform_indices = @transform_5, window_bounds = array<i64: 512, 32>}, {pipeline_mode = #tpu.pipeline_mode<synchronous>, transform_indices = @transform_6, window_bounds = array<i64: 2, 32>}, {pipeline_mode = #tpu.pipeline_mode<synchronous>, transform_indices = @transform_7, window_bounds = array<i64: 1, 32>}, {pipeline_mode = #tpu.pipeline_mode<synchronous>, transform_indices = @transform_8, window_bounds = array<i64: 32, 32>}, {pipeline_mode = #tpu.pipeline_mode<synchronous>, transform_indices = @transform_9, window_bounds = array<i64: 1, 32>}, {transform_indices = @transform_10, window_bounds = array<i64: 2, 32>}]} {
    %c0 = arith.constant 0 : index
    %c0_0 = arith.constant 0 : index
    %0 = vector.load %arg2[%c0, %c0_0] : memref<16x36xf32, #tpu.memory_space<vmem>>, vector<16x36xf32>
    %c0_1 = arith.constant 0 : index
    %c0_2 = arith.constant 0 : index
    %1 = vector.load %arg1[%c0_1, %c0_2] : memref<36x512xf32, #tpu.memory_space<vmem>>, vector<36x512xf32>
    %cst = arith.constant dense<0.000000e+00> : vector<16x512xf32>
    %2 = tpu.matmul %0, %1, %cst {dimension_numbers = #tpu.dot_dimension_numbers<[1], [0], [0], [1], [0, 0, 1, 1], [], []>} : vector<16x36xf32>, vector<36x512xf32>, vector<16x512xf32> -> vector<16x512xf32>
    %c0_3 = arith.constant 0 : index
    %c0_4 = arith.constant 0 : index
    %3 = vector.load %arg3[%c0_3, %c0_4] : memref<16x1xf32, #tpu.memory_space<vmem>>, vector<16x1xf32>
    %4 = vector.broadcast %3 : vector<16x1xf32> to vector<16x512xf32>
    %5 = arith.addf %2, %4 : vector<16x512xf32>
    %cst_5 = arith.constant 0.000000e+00 : f32
    %6 = vector.broadcast %cst_5 : f32 to vector<16x512xf32>
    %7 = arith.maximumf %5, %6 : vector<16x512xf32>
    %8 = vector.extract_strided_slice %7 {offsets = [0, 0], sizes = [16, 256], strides = [1, 1]} : vector<16x512xf32> to vector<16x256xf32>
    %9 = vector.extract_strided_slice %7 {offsets = [0, 256], sizes = [16, 256], strides = [1, 1]} : vector<16x512xf32> to vector<16x256xf32>
    %10 = tpu.concatenate %8, %9 in 0 : vector<16x256xf32>, vector<16x256xf32> -> vector<32x256xf32>
    %c0_6 = arith.constant 0 : index
    %c0_7 = arith.constant 0 : index
    %11 = vector.load %arg4[%c0_6, %c0_7] : memref<256x512xf32, #tpu.memory_space<vmem>>, vector<256x512xf32>
    %cst_8 = arith.constant dense<0.000000e+00> : vector<32x512xf32>
    %12 = tpu.matmul %10, %11, %cst_8 {dimension_numbers = #tpu.dot_dimension_numbers<[1], [0], [0], [1], [0, 0, 1, 1], [], []>} : vector<32x256xf32>, vector<256x512xf32>, vector<32x512xf32> -> vector<32x512xf32>
    %c0_9 = arith.constant 0 : index
    %c0_10 = arith.constant 0 : index
    %13 = vector.load %arg5[%c0_9, %c0_10] : memref<16x512xf32, #tpu.memory_space<vmem>>, vector<16x512xf32>
    %14 = tpu.concatenate %13, %13 in 0 : vector<16x512xf32>, vector<16x512xf32> -> vector<32x512xf32>
    %15 = arith.mulf %12, %14 : vector<32x512xf32>
    %c0_11 = arith.constant 0 : index
    %c0_12 = arith.constant 0 : index
    %16 = vector.load %arg6[%c0_11, %c0_12] : memref<512x32xf32, #tpu.memory_space<vmem>>, vector<512x32xf32>
    %cst_13 = arith.constant dense<0.000000e+00> : vector<32x32xf32>
    %17 = tpu.matmul %15, %16, %cst_13 {dimension_numbers = #tpu.dot_dimension_numbers<[1], [0], [0], [1], [0, 0, 1, 1], [], []>} : vector<32x512xf32>, vector<512x32xf32>, vector<32x32xf32> -> vector<32x32xf32>
    %c0_14 = arith.constant 0 : index
    %c0_15 = arith.constant 0 : index
    %18 = vector.load %arg7[%c0_14, %c0_15] : memref<2x32xf32, #tpu.memory_space<vmem>>, vector<2x32xf32>
    %cst_16 = arith.constant dense<0.000000e+00> : vector<2x32xf32>
    %19 = tpu.matmul %18, %17, %cst_16 {dimension_numbers = #tpu.dot_dimension_numbers<[1], [0], [0], [1], [0, 0, 1, 1], [], []>} : vector<2x32xf32>, vector<32x32xf32>, vector<2x32xf32> -> vector<2x32xf32>
    %c0_17 = arith.constant 0 : index
    %c0_18 = arith.constant 0 : index
    %20 = vector.load %arg8[%c0_17, %c0_18] : memref<1x32xf32, #tpu.memory_space<vmem>>, vector<1x32xf32>
    %21 = vector.broadcast %20 : vector<1x32xf32> to vector<2x32xf32>
    %22 = arith.addf %19, %21 : vector<2x32xf32>
    %cst_19 = arith.constant 0.000000e+00 : f32
    %23 = vector.broadcast %cst_19 : f32 to vector<2x32xf32>
    %24 = arith.maximumf %22, %23 : vector<2x32xf32>
    %c0_20 = arith.constant 0 : index
    %c0_21 = arith.constant 0 : index
    %25 = vector.load %arg9[%c0_20, %c0_21] : memref<32x32xf32, #tpu.memory_space<vmem>>, vector<32x32xf32>
    %cst_22 = arith.constant dense<0.000000e+00> : vector<2x32xf32>
    %26 = tpu.matmul %24, %25, %cst_22 {dimension_numbers = #tpu.dot_dimension_numbers<[1], [0], [0], [1], [0, 0, 1, 1], [], []>} : vector<2x32xf32>, vector<32x32xf32>, vector<2x32xf32> -> vector<2x32xf32>
    %c0_23 = arith.constant 0 : index
    %c0_24 = arith.constant 0 : index
    %27 = vector.load %arg10[%c0_23, %c0_24] : memref<1x32xf32, #tpu.memory_space<vmem>>, vector<1x32xf32>
    %28 = vector.broadcast %27 : vector<1x32xf32> to vector<2x32xf32>
    %29 = arith.addf %26, %28 : vector<2x32xf32>
    %cst_25 = arith.constant 0.000000e+00 : f32
    %30 = vector.broadcast %cst_25 : f32 to vector<2x32xf32>
    %31 = arith.maximumf %29, %30 : vector<2x32xf32>
    %c0_26 = arith.constant 0 : index
    %c0_27 = arith.constant 0 : index
    %32 = vector.load %arg11[%c0_26, %c0_27] : memref<2x32xf32, #tpu.memory_space<vmem>>, vector<2x32xf32>
    tpu.vector_store %arg11[%c0_26, %c0_27], %31 {strides = array<i32>} : memref<2x32xf32, #tpu.memory_space<vmem>>, vector<2x32xf32>,
    return
  }
  func.func @transform_0(%arg0: i32) -> (i32, i32) {
    %c0_i32 = arith.constant 0 : i32
    %c0_i32_0 = arith.constant 0 : i32
    return %c0_i32, %arg0 : i32, i32
  }
  func.func @transform_1(%arg0: i32) -> (i32, i32) {
    %c0_i32 = arith.constant 0 : i32
    %c0_i32_0 = arith.constant 0 : i32
    %c0_i32_1 = arith.constant 0 : i32
    return %c0_i32, %c0_i32_0 : i32, i32
  }
  func.func @transform_2(%arg0: i32) -> (i32, i32) {
    %c0_i32 = arith.constant 0 : i32
    %c0_i32_0 = arith.constant 0 : i32
    %c0_i32_1 = arith.constant 0 : i32
    return %c0_i32, %c0_i32_0 : i32, i32
  }
  func.func @transform_3(%arg0: i32) -> (i32, i32) {
    %c0_i32 = arith.constant 0 : i32
    %c0_i32_0 = arith.constant 0 : i32
    %c0_i32_1 = arith.constant 0 : i32
    return %c0_i32, %c0_i32_0 : i32, i32
  }
  func.func @transform_4(%arg0: i32) -> (i32, i32) {
    %c0_i32 = arith.constant 0 : i32
    %c0_i32_0 = arith.constant 0 : i32
    %c0_i32_1 = arith.constant 0 : i32
    return %c0_i32, %c0_i32_0 : i32, i32
  }
  func.func @transform_5(%arg0: i32) -> (i32, i32) {
    %c0_i32 = arith.constant 0 : i32
    %c0_i32_0 = arith.constant 0 : i32
    %c0_i32_1 = arith.constant 0 : i32
    return %c0_i32, %c0_i32_0 : i32, i32
  }
  func.func @transform_6(%arg0: i32) -> (i32, i32) {
    %c0_i32 = arith.constant 0 : i32
    %c0_i32_0 = arith.constant 0 : i32
    %c0_i32_1 = arith.constant 0 : i32
    return %c0_i32, %c0_i32_0 : i32, i32
  }
  func.func @transform_7(%arg0: i32) -> (i32, i32) {
    %c0_i32 = arith.constant 0 : i32
    %c0_i32_0 = arith.constant 0 : i32
    %c0_i32_1 = arith.constant 0 : i32
    return %c0_i32, %c0_i32_0 : i32, i32
  }
  func.func @transform_8(%arg0: i32) -> (i32, i32) {
    %c0_i32 = arith.constant 0 : i32
    %c0_i32_0 = arith.constant 0 : i32
    %c0_i32_1 = arith.constant 0 : i32
    return %c0_i32, %c0_i32_0 : i32, i32
  }
  func.func @transform_9(%arg0: i32) -> (i32, i32) {
    %c0_i32 = arith.constant 0 : i32
    %c0_i32_0 = arith.constant 0 : i32
    %c0_i32_1 = arith.constant 0 : i32
    return %c0_i32, %c0_i32_0 : i32, i32
  }
  func.func @transform_10(%arg0: i32) -> (i32, i32) {
    %c0_i32 = arith.constant 0 : i32
    %c0_i32_0 = arith.constant 0 : i32
    return %arg0, %c0_i32 : i32, i32
  }
}

</mosaic_0001>

<bundles_post_ra>
// kernel: squeeze.36
= control target key start
LH: loop header
LB: loop body
LE: loop exit
PB: predicated region body
PF: predicated region fallthrough
CT: control target
= control target key end

     0   :  { %s7_s6 = smov 3  ;;  %s10_s7 = smov 3  ;;  %vm12_vm0 = vcmask 15360   ;;  %vm4_vm1 = vcmask 113664   ;;  %vm16_vm2 = vcmask 97280   ;;  %vm19_vm3 = vcmask 1048560   ;;  %s222_s0 = inlined_call_operand.vmem [shape: f32[2,1,14,14], index: 0, kind: input, shape index: {}]   ;;  %s223_s1 = inlined_call_operand.vmem [shape: f32[2,1,196], index: 1, kind: output, shape index: {}]  }
   0x1   :  { %v120_v0 = vld [vmem:[%s222_s0 + $0x9] ss:$16 sm:%s7_s6]   ;;  %s29_s12 = smov 3  ;;  %s22_s15 = smov 3  ;;  %vm26_vm4 = vcmask 1032064   ;;  %vm33_vm5 = vcmask 917264  }
   0x2   :  { %v121_v1 = vld [vmem:[%s222_s0 + $0x9] ss:$16 sm:%s10_s7]   ;;  %v123_v3 = vld [vmem:[%s222_s0 + $0x7] ss:$16 sm:%s29_s12]   ;;  %s148_s16 = smov 126   ;;  %s149_s17 = smov 98  }
   0x3   :  { %v13_v2 = vsel %vm12_vm0, %v121_v1, %v120_v0  ;;  %31 = vrot.lane.b32.xlu1 %v123_v3, %s149_s17  ;;  %s36_s18 = smov 3  ;;  %v122_v4 = vld [vmem:[%s222_s0 + $0x8] ss:$16 sm:%s22_s15]   ;;  %s43_s23 = smov 3  ;;  %vm40_vm6 = vcmask 802464   ;;  %vm47_vm7 = vcmask 687664  }
   0x4   :  { %14 = vrot.lane.b32.xlu0 %v13_v2, %s148_s16  ;;  %v124_v5 = vld [vmem:[%s222_s0 + $0x6] ss:$16 sm:%s36_s18]   ;;  %s50_s24 = smov 3  ;;  %s150_s25 = smov 112   ;;  %vm54_vm8 = vcmask 572864   ;;  %vm61_vm9 = vcmask 556464  }
   0x5   :  { %s151_s26 = smov 84   ;;  %v125_v6 = vld [vmem:[%s222_s0 + $0x5] ss:$16 sm:%s43_s23]   ;;  %v126_v7 = vld [vmem:[%s222_s0 + $0x4] ss:$16 sm:%s50_s24]   ;;  %s57_s2 = smov 3 }
   0x6   :  { %s65_s3 = smov 3  ;;  %s152_s4 = smov 70   ;;  %v127_v8 = vld [vmem:[%s222_s0 + $0xd] ss:$16 sm:%s57_s2]   ;;  %vm69_vm10 = vcmask 458064   ;;  %vm76_vm11 = vcmask 441664  }
   0x7   :  { %38 = vrot.lane.b32.xlu1 %v124_v5, %s151_s26  ;;  %s153_s5 = smov 56   ;;  %v128_v9 = vld [vmem:[%s222_s0 + $0x3] ss:$16 sm:%s65_s3]   ;;  %s72_s10 = smov 3  ;;  %vm84_vm12 = vcmask 343264   ;;  %vm91_vm13 = vcmask 326864  }
   0x8   :  { %24 = vrot.lane.b32.xlu0 %v122_v4, %s150_s25  ;;  %s80_s11 = smov 3  ;;  %s2_s12 = smov 3  ;;  %v129_v11 = vld [vmem:[%s222_s0 + $0xc] ss:$16 sm:%s72_s10]   ;;  %vm99_vm14 = vcmask 228464   ;;  %vm106_vm15 = vcmask 212064  }
   0x9   :  { %v3_v10 = vld [vmem:[%s222_s0] ss:$16 sm:%s2_s12]   ;;  %s154_s15 = smov 54   ;;  %s155_s16 = smov 42   ;;  %v130_v12 = vld [vmem:[%s222_s0 + $0x2] ss:$16 sm:%s80_s11]  }
   0xa   :  { %5 = vst.msk [vmem:[#allocation0] sm:$0x3] %vm4_vm1, %v3_v10   ;;  %s87_s21 = smov 3  ;;  %s95_s22 = smov 3 }
   0xb   :  { %52 = vrot.lane.b32.xlu1 %v126_v7, %s153_s5  ;;  %s156_s23 = smov 40   ;;  %s157_s24 = smov 28   ;;  %v131_v13 = vld [vmem:[%s222_s0 + $0xb] ss:$16 sm:%s87_s21]  }
   0xc   :  { %45 = vrot.lane.b32.xlu0 %v125_v6, %s152_s4  ;;  %v132_v14 = vld [vmem:[%s222_s0 + $0x1] ss:$16 sm:%s95_s22]   ;;  %s102_s29 = smov 3  ;;  %s158_s30 = smov 26  }
   0xd   :  { %s159_s2 = smov 14   ;;  %v133_v15 = vld [vmem:[%s222_s0 + $0xa] ss:$16 sm:%s102_s29]   ;;  %s160_s0 = smov 12  }
   0xf   :  { %67 = vrot.lane.b32.xlu1 %v128_v9, %s155_s16 }
  0x10   :  { %59 = vrot.lane.b32.xlu0 %v127_v8, %s154_s15 }
  0x13   :  { %82 = vrot.lane.b32.xlu1 %v130_v12, %s157_s24 }
  0x14   :  { %74 = vrot.lane.b32.xlu0 %v129_v11, %s156_s23 }
  0x17   :  { %97 = vrot.lane.b32.xlu1 %v132_v14, %s159_s2 }
  0x18   :  { %89 = vrot.lane.b32.xlu0 %v131_v13, %s158_s30 }
  0x1c   :  { %104 = vrot.lane.b32.xlu0 %v133_v15, %s160_s0 }
  0x75   :  { %v32_v17 = vpop.permute.xlu1 %31  }
  0x76   :  { %v15_v16 = vpop.permute.xlu0 %14  }
  0x77   :  { %18 = vst.msk [vmem:[#allocation0 + $0x8] sm:$0x3] %vm16_vm2, %v15_v16  }
  0x78   :  { %20 = vst.msk [vmem:[#allocation0] sm:$0x3] %vm19_vm3, %v15_v16  }
  0x79   :  { %v39_v19 = vpop.permute.xlu1 %38  }
  0x7a   :  { %v25_v18 = vpop.permute.xlu0 %24  }
  0x7b   :  { %27 = vst.msk [vmem:[#allocation0] sm:$0x3] %vm26_vm4, %v25_v18  }
  0x7c   :  { %34 = vst.msk [vmem:[#allocation0] sm:$0x3] %vm33_vm5, %v32_v17  }
  0x7d   :  { %41 = vst.msk [vmem:[#allocation0] sm:$0x3] %vm40_vm6, %v39_v19   ;;  %v53_v21 = vpop.permute.xlu1 %52  }
  0x7e   :  { %v46_v20 = vpop.permute.xlu0 %45  }
  0x7f   :  { %48 = vst.msk [vmem:[#allocation0] sm:$0x3] %vm47_vm7, %v46_v20  }
  0x80   :  { %55 = vst.msk [vmem:[#allocation0] sm:$0x3] %vm54_vm8, %v53_v21  }
  0x81   :  { %v68_v23 = vpop.permute.xlu1 %67  }
  0x82   :  { %v60_v22 = vpop.permute.xlu0 %59   ;;  %70 = vst.msk [vmem:[#allocation0] sm:$0x3] %vm69_vm10, %v68_v23  }
  0x83   :  { %63 = vst.msk [vmem:[#allocation0 + $0x8] sm:$0x3] %vm61_vm9, %v60_v22  }
  0x85   :  { %v83_v25 = vpop.permute.xlu1 %82  }
  0x86   :  { %v75_v24 = vpop.permute.xlu0 %74   ;;  %85 = vst.msk [vmem:[#allocation0] sm:$0x3] %vm84_vm12, %v83_v25  }
  0x87   :  { %78 = vst.msk [vmem:[#allocation0 + $0x8] sm:$0x3] %vm76_vm11, %v75_v24  }
  0x89   :  { %v98_v27 = vpop.permute.xlu1 %97  }
  0x8a   :  { %v90_v26 = vpop.permute.xlu0 %89   ;;  %100 = vst.msk [vmem:[#allocation0] sm:$0x3] %vm99_vm14, %v98_v27  }
  0x8b   :  { %93 = vst.msk [vmem:[#allocation0 + $0x8] sm:$0x3] %vm91_vm13, %v90_v26  }
  0x8e   :  { %v105_v28 = vpop.permute.xlu0 %104  }
  0x8f   :  { %108 = vst.msk [vmem:[#allocation0 + $0x8] sm:$0x3] %vm106_vm15, %v105_v28  }
  0x91   :  { %v112_v29 = vld [vmem:[#allocation0] sm:$0x3] }
  0x92   :  { %114 = vst [vmem:[%s223_s1] sm:$0x3] %v112_v29 }
  0x96   :  { %v116_v30 = vld [vmem:[#allocation0 + $0x8] sm:$0x3] }
  0x97   :  { %134 = vst [vmem:[%s223_s1 + $0x2] sm:$0x3] %v116_v30 }

// kernel: cnn_layer_forward.1
= control target key start
LH: loop header
LB: loop body
LE: loop exit
PB: predicated region body
PF: predicated region fallthrough
CT: control target
= control target key end

     0   :  { %v1382_v7 = vmov 0.0   ;;  %v1383_v13 = vmov 0   ;;  %vm77_vm0 = vcmask 1043456   ;;  %vm70_vm1 = vcmask 293888   ;;  %s2161_s0 = inlined_call_operand.vmem [shape: f32[36,512], index: 0, kind: input, shape index: {}]   ;;  %s2162_s1 = inlined_call_operand.vmem [shape: f32[16,36], index: 1, kind: input, shape index: {}]   ;;  %s2163_s2 = inlined_call_operand.vmem [shape: f32[16,1], index: 2, kind: input, shape index: {}]   ;;  %s2164_s3 = inlined_call_operand.vmem [shape: f32[256,512], index: 3, kind: input, shape index: {}]   ;;  %s2165_s4 = inlined_call_operand.vmem [shape: f32[16,512], index: 4, kind: input, shape index: {}]   ;;  %s2166_s5 = inlined_call_operand.vmem [shape: f32[512,32], index: 5, kind: input, shape index: {}]   ;;  %s2167_s6 = inlined_call_operand.vmem [shape: f32[2,32], index: 6, kind: input, shape index: {}]   ;;  %s2168_s7 = inlined_call_operand.vmem [shape: f32[1,32], index: 7, kind: input, shape index: {}]   ;;  %s2169_s8 = inlined_call_operand.vmem [shape: f32[32,32], index: 8, kind: input, shape index: {}]   ;;  %s2170_s9 = inlined_call_operand.vmem [shape: f32[1,32], index: 9, kind: input, shape index: {}]   ;;  %s2171_s10 = inlined_call_operand.hbm [shape: f32[2,32], index: 10, kind: output, shape index: {}]  }
   0x1   :  { %v39_v0 = vld [vmem:[%s2161_s0 + $0x8] sm:$0xff]  ;;  %v41_v2 = vld [vmem:[%s2161_s0 + $0x18] sm:$0xff]  ;;  %v38_v5 = vld [vmem:[%s2161_s0] sm:$0xff]  ;;  %154 = vmatprep.mubr.f32.mxu0 %v1382_v7  ;;  %231 = vmatprep.mubr.f32.mxu1 %v1382_v7 }
   0x2   :  { %v43_v1 = vld [vmem:[%s2161_s0 + $0x28] sm:$0xff]  ;;  %v45_v4 = vld [vmem:[%s2161_s0 + $0x38] sm:$0xff]  ;;  %v42_v6 = vld [vmem:[%s2161_s0 + $0x20] sm:$0xff]  ;;  %1357 = vset.pattern.permute.xlu0 %v1383_v13 }
   0x3   :  { %v1132_v3 = vpack.c.bf16 %v43_v1, %v39_v0  ;;  %v1140_v8 = vpack.c.bf16 %v45_v4, %v41_v2  ;;  %v1134_v9 = vpack.c.bf16 %v42_v6, %v38_v5  ;;  %v40_v10 = vld [vmem:[%s2161_s0 + $0x10] sm:$0xff]  ;;  %v47_v12 = vld [vmem:[%s2161_s0 + $0x48] sm:$0xff]  ;;  %v49_v16 = vld [vmem:[%s2161_s0 + $0x58] sm:$0xff] }
   0x4   :  { %v44_v11 = vld [vmem:[%s2161_s0 + $0x30] sm:$0xff]  ;;  %v51_v15 = vld [vmem:[%s2161_s0 + $0x68] sm:$0xff]  ;;  %v53_v17 = vld [vmem:[%s2161_s0 + $0x78] sm:$0xff] }
   0x5   :  { %1133 = vmatprep.subr.bf16.mxu0 %v1132_v3  ;;  %v1142_v14 = vpack.c.bf16 %v44_v11, %v40_v10  ;;  %1141 = vmatprep.subr.bf16.mxu1 %v1140_v8  ;;  %v1136_v18 = vpack.c.bf16 %v51_v15, %v47_v12  ;;  %v1144_v19 = vpack.c.bf16 %v53_v17, %v49_v16  ;;  %v46_v20 = vld [vmem:[%s2161_s0 + $0x40] sm:$0xff]  ;;  %v48_v22 = vld [vmem:[%s2161_s0 + $0x50] sm:$0xff]  ;;  %v55_v26 = vld [vmem:[%s2161_s0 + $0x88] sm:$0xf] }
   0x6   :  { %1135 = vmatpush1.bf16.msra.mxu0 %v1134_v9  ;;  %v50_v21 = vld [vmem:[%s2161_s0 + $0x60] sm:$0xff]  ;;  %v52_v24 = vld [vmem:[%s2161_s0 + $0x70] sm:$0xff]  ;;  %v57_v27 = vld [vmem:[%s2161_s0 + $0x98] sm:$0xf] }
   0x7   :  { %1143 = vmatpush1.bf16.msra.mxu1 %v1142_v14  ;;  %v1138_v23 = vpack.c.bf16 %v50_v21, %v46_v20  ;;  %1137 = vmatprep.subr.bf16.mxu0 %v1136_v18  ;;  %v1146_v25 = vpack.c.bf16 %v52_v24, %v48_v22  ;;  %v54_v28 = vld [vmem:[%s2161_s0 + $0x80] sm:$0xf]  ;;  %v59_v30 = vld [vmem:[%s2163_s2 + $0x8] sm:$0xff]  ;;  %v56_v31 = vld [vmem:[%s2161_s0 + $0x90] sm:$0xf] }
   0x8   :  { %1145 = vmatprep.subr.bf16.mxu1 %v1144_v19  ;;  %v58_v29 = vld [vmem:[%s2163_s2] sm:$0xff]  ;;  %v253_v32 = vld [vmem:[%s2164_s3 + $0x8] sm:$0xff]  ;;  %v255_v34 = vld [vmem:[%s2164_s3 + $0x18] sm:$0xff] }
   0x9   :  { %62 = vperm.xlu0 %1357, %v58_v29   ;;  %v257_v33 = vld [vmem:[%s2164_s3 + $0x28] sm:$0xff]  ;;  %v259_v35 = vld [vmem:[%s2164_s3 + $0x38] sm:$0xff]  ;;  %v252_v36 = vld [vmem:[%s2164_s3] sm:$0xff] }
   0xa   :  { %1139 = vmatpush1.bf16.msra.mxu0 %v1138_v23  ;;  %v256_v37 = vld [vmem:[%s2164_s3 + $0x20] sm:$0xff]  ;;  %v254_v39 = vld [vmem:[%s2164_s3 + $0x10] sm:$0xff]  ;;  %v1148_v41 = vpack.c.bf16 %v257_v33, %v253_v32  ;;  %v261_v42 = vld [vmem:[%s2164_s3 + $0x48] sm:$0xff]  ;;  %v1212_v45 = vpack.c.bf16 %v259_v35, %v255_v34 }
   0xb   :  { %1147 = vmatpush1.bf16.msra.mxu1 %v1146_v25  ;;  %1000 = vmatprep.subr.msk.mxu0 %vm77_vm0, %v55_v26  ;;  %v36_v38 = vld [vmem:[%s2162_s1] sm:$0xff]  ;;  %v258_v40 = vld [vmem:[%s2164_s3 + $0x30] sm:$0xff]  ;;  %v265_v43 = vld [vmem:[%s2164_s3 + $0x68] sm:$0xff]  ;;  %v1150_v46 = vpack.c.bf16 %v256_v37, %v252_v36 }
   0xc   :  { %1004 = vmatprep.subr.msk.mxu1 %vm77_vm0, %v57_v27  ;;  %v37_v44 = vld [vmem:[%s2162_s1 + $0x8] sm:$0xff]  ;;  %v263_v47 = vld [vmem:[%s2164_s3 + $0x58] sm:$0xff]  ;;  %v1214_v49 = vpack.c.bf16 %v258_v40, %v254_v39  ;;  %v260_v50 = vld [vmem:[%s2164_s3 + $0x40] sm:$0xff]  ;;  %v1152_v53 = vpack.c.bf16 %v265_v43, %v261_v42 }
   0xd   :  { %67 = vperm.xlu0 %1357, %v59_v30   ;;  %v267_v48 = vld [vmem:[%s2164_s3 + $0x78] sm:$0xff]  ;;  %v264_v51 = vld [vmem:[%s2164_s3 + $0x60] sm:$0xff]  ;;  %v262_v52 = vld [vmem:[%s2164_s3 + $0x50] sm:$0xff] }
   0xe   :  { %1001 = vmatpush1.msk.msra.mxu0 %vm77_vm0, %v54_v28  ;;  %v266_v54 = vld [vmem:[%s2164_s3 + $0x70] sm:$0xff]  ;;  %v269_v55 = vld [vmem:[%s2164_s3 + $0x88] sm:$0xff]  ;;  %v1216_v57 = vpack.c.bf16 %v267_v48, %v263_v47  ;;  %v271_v58 = vld [vmem:[%s2164_s3 + $0x98] sm:$0xff]  ;;  %v1154_v60 = vpack.c.bf16 %v264_v51, %v260_v50 }
   0xf   :  { %1005 = vmatpush1.msk.msra.mxu1 %vm77_vm0, %v56_v31  ;;  %1002 = vmatmul.mubr.msk.f32.vlgmr.msra.gmra.mrb[0].mxu0 %vm70_vm1, %v36_v38  ;;  %v273_v56 = vld [vmem:[%s2164_s3 + $0xa8] sm:$0xff]  ;;  %v275_v59 = vld [vmem:[%s2164_s3 + $0xb8] sm:$0xff]  ;;  %v1218_v61 = vpack.c.bf16 %v266_v54, %v262_v52  ;;  %v268_v63 = vld [vmem:[%s2164_s3 + $0x80] sm:$0xff] }
  0x10   :  { %1006 = vmatmul.mubr.msk.f32.vlgmr.msra.gmra.mrb[0].mxu1 %vm70_vm1, %v36_v38  ;;  %160 = vmatprep.mubr.f32.mxu0 %v1382_v7  ;;  %v1156_v62 = vpack.c.bf16 %v273_v56, %v269_v55  ;;  %v272_v0 = vld [vmem:[%s2164_s3 + $0xa0] sm:$0xff]  ;;  %v270_v1 = vld [vmem:[%s2164_s3 + $0x90] sm:$0xff]  ;;  %v1220_v2 = vpack.c.bf16 %v275_v59, %v271_v58  ;;  %v277_v4 = vld [vmem:[%s2164_s3 + $0xc8] sm:$0xff] }
  0x11   :  { %237 = vmatprep.mubr.f32.mxu1 %v1382_v7  ;;  %1149 = vmatprep.subr.bf16.mxu0 %v1148_v41  ;;  %v274_v3 = vld [vmem:[%s2164_s3 + $0xb0] sm:$0xff]  ;;  %v281_v5 = vld [vmem:[%s2164_s3 + $0xe8] sm:$0xff]  ;;  %v279_v6 = vld [vmem:[%s2164_s3 + $0xd8] sm:$0xff]  ;;  %v1158_v9 = vpack.c.bf16 %v272_v0, %v268_v63 }
  0x12   :  { %1213 = vmatprep.subr.bf16.mxu1 %v1212_v45  ;;  %1151 = vmatpush1.bf16.msra.mxu0 %v1150_v46  ;;  %v283_v8 = vld [vmem:[%s2164_s3 + $0xf8] sm:$0xff]  ;;  %v1222_v10 = vpack.c.bf16 %v274_v3, %v270_v1  ;;  %v1160_v11 = vpack.c.bf16 %v281_v5, %v277_v4  ;;  %v276_v12 = vld [vmem:[%s2164_s3 + $0xc0] sm:$0xff]  ;;  %v278_v14 = vld [vmem:[%s2164_s3 + $0xd0] sm:$0xff] }
  0x13   :  { %1003 = vmatmul.mubr.msk.f32.gmra.mrb[2].mxu0 %vm70_vm1, %v37_v44  ;;  %1215 = vmatpush1.bf16.msra.mxu1 %v1214_v49  ;;  %v280_v13 = vld [vmem:[%s2164_s3 + $0xe0] sm:$0xff]  ;;  %v1224_v15 = vpack.c.bf16 %v283_v8, %v279_v6  ;;  %v282_v16 = vld [vmem:[%s2164_s3 + $0xf0] sm:$0xff]  ;;  %v285_v17 = vld [vmem:[%s2164_s3 + $0x108] sm:$0xff] }
  0x14   :  { %1007 = vmatmul.mubr.msk.f32.gmra.mrb[2].mxu1 %vm70_vm1, %v37_v44  ;;  %1153 = vmatprep.subr.bf16.mxu0 %v1152_v53  ;;  %v289_v18 = vld [vmem:[%s2164_s3 + $0x128] sm:$0xff]  ;;  %v287_v19 = vld [vmem:[%s2164_s3 + $0x118] sm:$0xff]  ;;  %v1162_v21 = vpack.c.bf16 %v280_v13, %v276_v12  ;;  %v1226_v22 = vpack.c.bf16 %v282_v16, %v278_v14  ;;  %v284_v24 = vld [vmem:[%s2164_s3 + $0x100] sm:$0xff] }
  0x15   :  { %1217 = vmatprep.subr.bf16.mxu1 %v1216_v57  ;;  %v291_v20 = vld [vmem:[%s2164_s3 + $0x138] sm:$0xff]  ;;  %v1164_v23 = vpack.c.bf16 %v289_v18, %v285_v17  ;;  %v288_v25 = vld [vmem:[%s2164_s3 + $0x120] sm:$0xff]  ;;  %v286_v26 = vld [vmem:[%s2164_s3 + $0x110] sm:$0xff] }
  0x16   :  { %1155 = vmatpush1.bf16.msra.mxu0 %v1154_v60  ;;  %v1228_v27 = vpack.c.bf16 %v291_v20, %v287_v19  ;;  %v290_v28 = vld [vmem:[%s2164_s3 + $0x130] sm:$0xff]  ;;  %v293_v29 = vld [vmem:[%s2164_s3 + $0x148] sm:$0xff]  ;;  %v295_v31 = vld [vmem:[%s2164_s3 + $0x158] sm:$0xff]  ;;  %v1166_v33 = vpack.c.bf16 %v288_v25, %v284_v24 }
  0x17   :  { %1219 = vmatpush1.bf16.msra.mxu1 %v1218_v61  ;;  %1157 = vmatprep.subr.bf16.mxu0 %v1156_v62  ;;  %v297_v30 = vld [vmem:[%s2164_s3 + $0x168] sm:$0xff]  ;;  %v299_v32 = vld [vmem:[%s2164_s3 + $0x178] sm:$0xff]  ;;  %v1230_v34 = vpack.c.bf16 %v290_v28, %v286_v26  ;;  %v292_v36 = vld [vmem:[%s2164_s3 + $0x140] sm:$0xff] }
  0x18   :  { %1221 = vmatprep.subr.bf16.mxu1 %v1220_v2  ;;  %v1168_v35 = vpack.c.bf16 %v297_v30, %v293_v29  ;;  %v296_v37 = vld [vmem:[%s2164_s3 + $0x160] sm:$0xff]  ;;  %v294_v38 = vld [vmem:[%s2164_s3 + $0x150] sm:$0xff]  ;;  %v1232_v39 = vpack.c.bf16 %v299_v32, %v295_v31  ;;  %v301_v41 = vld [vmem:[%s2164_s3 + $0x188] sm:$0xff] }
  0x19   :  { %v298_v40 = vld [vmem:[%s2164_s3 + $0x170] sm:$0xff]  ;;  %v305_v42 = vld [vmem:[%s2164_s3 + $0x1a8] sm:$0xff]  ;;  %v303_v43 = vld [vmem:[%s2164_s3 + $0x198] sm:$0xff]  ;;  %v1170_v45 = vpack.c.bf16 %v296_v37, %v292_v36 }
  0x1a   :  { %1159 = vmatpush1.bf16.msra.mxu0 %v1158_v9  ;;  %v307_v44 = vld [vmem:[%s2164_s3 + $0x1b8] sm:$0xff]  ;;  %v1234_v46 = vpack.c.bf16 %v298_v40, %v294_v38  ;;  %v1172_v47 = vpack.c.bf16 %v305_v42, %v301_v41  ;;  %v300_v48 = vld [vmem:[%s2164_s3 + $0x180] sm:$0xff]  ;;  %v302_v50 = vld [vmem:[%s2164_s3 + $0x190] sm:$0xff] }
  0x1b   :  { %1223 = vmatpush1.bf16.msra.mxu1 %v1222_v10  ;;  %1161 = vmatprep.subr.bf16.mxu0 %v1160_v11  ;;  %v304_v49 = vld [vmem:[%s2164_s3 + $0x1a0] sm:$0xff]  ;;  %v1236_v51 = vpack.c.bf16 %v307_v44, %v303_v43  ;;  %v306_v52 = vld [vmem:[%s2164_s3 + $0x1b0] sm:$0xff]  ;;  %v309_v53 = vld [vmem:[%s2164_s3 + $0x1c8] sm:$0xff] }
  0x1c   :  { %1225 = vmatprep.subr.bf16.mxu1 %v1224_v15  ;;  %v313_v54 = vld [vmem:[%s2164_s3 + $0x1e8] sm:$0xff]  ;;  %v311_v55 = vld [vmem:[%s2164_s3 + $0x1d8] sm:$0xff]  ;;  %v1174_v57 = vpack.c.bf16 %v304_v49, %v300_v48  ;;  %v1238_v58 = vpack.c.bf16 %v306_v52, %v302_v50  ;;  %v308_v60 = vld [vmem:[%s2164_s3 + $0x1c0] sm:$0xff] }
  0x1d   :  { %v315_v56 = vld [vmem:[%s2164_s3 + $0x1f8] sm:$0xff]  ;;  %v1176_v59 = vpack.c.bf16 %v313_v54, %v309_v53  ;;  %v312_v61 = vld [vmem:[%s2164_s3 + $0x1e0] sm:$0xff]  ;;  %v310_v62 = vld [vmem:[%s2164_s3 + $0x1d0] sm:$0xff] }
  0x1e   :  { %1163 = vmatpush1.bf16.msra.mxu0 %v1162_v21  ;;  %v1240_v63 = vpack.c.bf16 %v315_v56, %v311_v55  ;;  %v314_v0 = vld [vmem:[%s2164_s3 + $0x1f0] sm:$0xff]  ;;  %v317_v1 = vld [vmem:[%s2164_s3 + $0x208] sm:$0xff]  ;;  %v319_v3 = vld [vmem:[%s2164_s3 + $0x218] sm:$0xff]  ;;  %v1178_v5 = vpack.c.bf16 %v312_v61, %v308_v60 }
  0x1f   :  { %1227 = vmatpush1.bf16.msra.mxu1 %v1226_v22  ;;  %1165 = vmatprep.subr.bf16.mxu0 %v1164_v23  ;;  %v321_v2 = vld [vmem:[%s2164_s3 + $0x228] sm:$0xff]  ;;  %v323_v4 = vld [vmem:[%s2164_s3 + $0x238] sm:$0xff]  ;;  %v1242_v6 = vpack.c.bf16 %v314_v0, %v310_v62  ;;  %v316_v9 = vld [vmem:[%s2164_s3 + $0x200] sm:$0xff] }
  0x20   :  { %1229 = vmatprep.subr.bf16.mxu1 %v1228_v27  ;;  %v1180_v8 = vpack.c.bf16 %v321_v2, %v317_v1  ;;  %v320_v10 = vld [vmem:[%s2164_s3 + $0x220] sm:$0xff]  ;;  %v318_v11 = vld [vmem:[%s2164_s3 + $0x210] sm:$0xff]  ;;  %v1244_v12 = vpack.c.bf16 %v323_v4, %v319_v3  ;;  %v325_v14 = vld [vmem:[%s2164_s3 + $0x248] sm:$0xff] }
  0x21   :  { %v322_v13 = vld [vmem:[%s2164_s3 + $0x230] sm:$0xff]  ;;  %v329_v15 = vld [vmem:[%s2164_s3 + $0x268] sm:$0xff]  ;;  %v327_v16 = vld [vmem:[%s2164_s3 + $0x258] sm:$0xff]  ;;  %v1182_v18 = vpack.c.bf16 %v320_v10, %v316_v9 }
  0x22   :  { %1167 = vmatpush1.bf16.msra.mxu0 %v1166_v33  ;;  %v331_v17 = vld [vmem:[%s2164_s3 + $0x278] sm:$0xff]  ;;  %v324_v19 = vld [vmem:[%s2164_s3 + $0x240] sm:$0xff]  ;;  %v1246_v20 = vpack.c.bf16 %v322_v13, %v318_v11  ;;  %v1184_v21 = vpack.c.bf16 %v329_v15, %v325_v14  ;;  %v326_v23 = vld [vmem:[%s2164_s3 + $0x250] sm:$0xff] }
  0x23   :  { %1231 = vmatpush1.bf16.msra.mxu1 %v1230_v34  ;;  %1169 = vmatprep.subr.bf16.mxu0 %v1168_v35  ;;  %v328_v22 = vld [vmem:[%s2164_s3 + $0x260] sm:$0xff]  ;;  %v330_v24 = vld [vmem:[%s2164_s3 + $0x270] sm:$0xff]  ;;  %v1248_v25 = vpack.c.bf16 %v331_v17, %v327_v16  ;;  %v333_v26 = vld [vmem:[%s2164_s3 + $0x288] sm:$0xff] }
  0x24   :  { %1233 = vmatprep.subr.bf16.mxu1 %v1232_v39  ;;  %v337_v27 = vld [vmem:[%s2164_s3 + $0x2a8] sm:$0xff] }
  0x26   :  { %1171 = vmatpush1.bf16.msra.mxu0 %v1170_v45 }
  0x27   :  { %1235 = vmatpush1.bf16.msra.mxu1 %v1234_v46  ;;  %1173 = vmatprep.subr.bf16.mxu0 %v1172_v47 }
  0x28   :  { %1237 = vmatprep.subr.bf16.mxu1 %v1236_v51 }
  0x2a   :  { %1175 = vmatpush1.bf16.msra.mxu0 %v1174_v57 }
  0x2b   :  { %1239 = vmatpush1.bf16.msra.mxu1 %v1238_v58  ;;  %1177 = vmatprep.subr.bf16.mxu0 %v1176_v59 }
  0x2c   :  { %1241 = vmatprep.subr.bf16.mxu1 %v1240_v63 }
  0x2e   :  { %1179 = vmatpush1.bf16.msra.mxu0 %v1178_v5 }
  0x2f   :  { %1243 = vmatpush1.bf16.msra.mxu1 %v1242_v6  ;;  %1181 = vmatprep.subr.bf16.mxu0 %v1180_v8 }
  0x30   :  { %1245 = vmatprep.subr.bf16.mxu1 %v1244_v12 }
  0x31   :  { %15 = vsyncpa [#allocation3], 0  ;;  %v335_v28 = vld [vmem:[%s2164_s3 + $0x298] sm:$0xff]  ;;  %v1186_v30 = vpack.c.bf16 %v328_v22, %v324_v19  ;;  %v1250_v31 = vpack.c.bf16 %v330_v24, %v326_v23  ;;  %v1188_v32 = vpack.c.bf16 %v337_v27, %v333_v26  ;;  %v332_v33 = vld [vmem:[%s2164_s3 + $0x280] sm:$0xff]  ;;  %vm1385_vm2 = vmmov 0   ;;  %s1386_s12 = smov [#allocation2]  }
  0x32   :  { %v339_v29 = vld [vmem:[%s2164_s3 + $0x2b8] sm:$0xff]  ;;  %1183 = vmatpush1.bf16.msra.mxu0 %v1182_v18  ;;  %v336_v34 = vld [vmem:[%s2164_s3 + $0x2a0] sm:$0xff]  ;;  %v334_v35 = vld [vmem:[%s2164_s3 + $0x290] sm:$0xff]  ;;  %vm824_vm3 = vcmask 261120   ;;  %s992_s13 = sshll.u32 %s1386_s12, 4  ;;  %vm984_vm4 = vcmask 254976   ;;  %s993_s13 = int_to_ptr.vmem [resolvable:$true] %s992_s13 }
  0x33   :  { %1247 = vmatpush1.bf16.msra.mxu1 %v1246_v20  ;;  %1185 = vmatprep.subr.bf16.mxu0 %v1184_v21  ;;  %v1252_v36 = vpack.c.bf16 %v339_v29, %v335_v28  ;;  %v338_v37 = vld [vmem:[%s2164_s3 + $0x2b0] sm:$0xff]  ;;  %v341_v38 = vld [vmem:[%s2164_s3 + $0x2c8] sm:$0xff]  ;;  %v343_v40 = vld [vmem:[%s2164_s3 + $0x2d8] sm:$0xff]  ;;  %v1190_v42 = vpack.c.bf16 %v336_v34, %v332_v33  ;;  %p1363_p1 = scmp.lt.s32.totalorder %s993_s13, %s993_s13 }
  0x34   :  { %1249 = vmatprep.subr.bf16.mxu1 %v1248_v25  ;;  %v345_v39 = vld [vmem:[%s2164_s3 + $0x2e8] sm:$0xff]  ;;  %v347_v41 = vld [vmem:[%s2164_s3 + $0x2f8] sm:$0xff]  ;;  %v1254_v43 = vpack.c.bf16 %v338_v37, %v334_v35  ;;  %v340_v45 = vld [vmem:[%s2164_s3 + $0x2c0] sm:$0xff] }
  0x35   :  { %v1192_v44 = vpack.c.bf16 %v345_v39, %v341_v38  ;;  %v344_v46 = vld [vmem:[%s2164_s3 + $0x2e0] sm:$0xff]  ;;  %v342_v47 = vld [vmem:[%s2164_s3 + $0x2d0] sm:$0xff]  ;;  %v1256_v48 = vpack.c.bf16 %v347_v41, %v343_v40  ;;  %v349_v50 = vld [vmem:[%s2164_s3 + $0x308] sm:$0xff] }
  0x36   :  { %1187 = vmatpush1.bf16.msra.mxu0 %v1186_v30  ;;  %v346_v49 = vld [vmem:[%s2164_s3 + $0x2f0] sm:$0xff]  ;;  %v353_v51 = vld [vmem:[%s2164_s3 + $0x328] sm:$0xff]  ;;  %v351_v52 = vld [vmem:[%s2164_s3 + $0x318] sm:$0xff]  ;;  %v1194_v54 = vpack.c.bf16 %v344_v46, %v340_v45 }
  0x37   :  { %1251 = vmatpush1.bf16.msra.mxu1 %v1250_v31  ;;  %1189 = vmatprep.subr.bf16.mxu0 %v1188_v32  ;;  %v355_v53 = vld [vmem:[%s2164_s3 + $0x338] sm:$0xff]  ;;  %v1258_v55 = vpack.c.bf16 %v346_v49, %v342_v47  ;;  %v1196_v56 = vpack.c.bf16 %v353_v51, %v349_v50  ;;  %v348_v57 = vld [vmem:[%s2164_s3 + $0x300] sm:$0xff]  ;;  %v350_v59 = vld [vmem:[%s2164_s3 + $0x310] sm:$0xff] }
  0x38   :  { %1253 = vmatprep.subr.bf16.mxu1 %v1252_v36  ;;  %v352_v58 = vld [vmem:[%s2164_s3 + $0x320] sm:$0xff]  ;;  %v1260_v60 = vpack.c.bf16 %v355_v53, %v351_v52  ;;  %v354_v61 = vld [vmem:[%s2164_s3 + $0x330] sm:$0xff]  ;;  %v357_v62 = vld [vmem:[%s2164_s3 + $0x348] sm:$0xff] }
  0x39   :  { %v361_v63 = vld [vmem:[%s2164_s3 + $0x368] sm:$0xff]  ;;  %v359_v0 = vld [vmem:[%s2164_s3 + $0x358] sm:$0xff]  ;;  %v1198_v2 = vpack.c.bf16 %v352_v58, %v348_v57  ;;  %v1262_v3 = vpack.c.bf16 %v354_v61, %v350_v59  ;;  %v356_v5 = vld [vmem:[%s2164_s3 + $0x340] sm:$0xff] }
  0x3a   :  { %1191 = vmatpush1.bf16.msra.mxu0 %v1190_v42  ;;  %v363_v1 = vld [vmem:[%s2164_s3 + $0x378] sm:$0xff]  ;;  %v1200_v4 = vpack.c.bf16 %v361_v63, %v357_v62  ;;  %v360_v6 = vld [vmem:[%s2164_s3 + $0x360] sm:$0xff]  ;;  %v358_v8 = vld [vmem:[%s2164_s3 + $0x350] sm:$0xff] }
  0x3b   :  { %1255 = vmatpush1.bf16.msra.mxu1 %v1254_v43  ;;  %1193 = vmatprep.subr.bf16.mxu0 %v1192_v44  ;;  %v1264_v9 = vpack.c.bf16 %v363_v1, %v359_v0  ;;  %v362_v10 = vld [vmem:[%s2164_s3 + $0x370] sm:$0xff]  ;;  %v365_v11 = vld [vmem:[%s2164_s3 + $0x388] sm:$0xff]  ;;  %v367_v13 = vld [vmem:[%s2164_s3 + $0x398] sm:$0xff]  ;;  %v1202_v15 = vpack.c.bf16 %v360_v6, %v356_v5 }
  0x3c   :  { %1257 = vmatprep.subr.bf16.mxu1 %v1256_v48  ;;  %v369_v12 = vld [vmem:[%s2164_s3 + $0x3a8] sm:$0xff]  ;;  %v371_v14 = vld [vmem:[%s2164_s3 + $0x3b8] sm:$0xff]  ;;  %v1266_v16 = vpack.c.bf16 %v362_v10, %v358_v8  ;;  %v364_v19 = vld [vmem:[%s2164_s3 + $0x380] sm:$0xff] }
  0x3d   :  { %v1204_v17 = vpack.c.bf16 %v369_v12, %v365_v11  ;;  %v1268_v18 = vpack.c.bf16 %v371_v14, %v367_v13  ;;  %v368_v20 = vld [vmem:[%s2164_s3 + $0x3a0] sm:$0xff]  ;;  %v366_v21 = vld [vmem:[%s2164_s3 + $0x390] sm:$0xff]  ;;  %v373_v25 = vld [vmem:[%s2164_s3 + $0x3c8] sm:$0xff] }
  0x3e   :  { %1195 = vmatpush1.bf16.msra.mxu0 %v1194_v54  ;;  %v1206_v22 = vpack.c.bf16 %v368_v20, %v364_v19  ;;  %v370_v23 = vld [vmem:[%s2164_s3 + $0x3b0] sm:$0xff]  ;;  %v377_v26 = vld [vmem:[%s2164_s3 + $0x3e8] sm:$0xff]  ;;  %v375_v27 = vld [vmem:[%s2164_s3 + $0x3d8] sm:$0xff] }
  0x3f   :  { %1259 = vmatpush1.bf16.msra.mxu1 %v1258_v55  ;;  %1197 = vmatprep.subr.bf16.mxu0 %v1196_v56  ;;  %v1270_v24 = vpack.c.bf16 %v370_v23, %v366_v21  ;;  %v1208_v28 = vpack.c.bf16 %v377_v26, %v373_v25  ;;  %v379_v29 = vld [vmem:[%s2164_s3 + $0x3f8] sm:$0xff]  ;;  %v372_v30 = vld [vmem:[%s2164_s3 + $0x3c0] sm:$0xff]  ;;  %v374_v34 = vld [vmem:[%s2164_s3 + $0x3d0] sm:$0xff] }
  0x40   :  { %1261 = vmatprep.subr.bf16.mxu1 %v1260_v60  ;;  %v376_v31 = vld [vmem:[%s2164_s3 + $0x3e0] sm:$0xff]  ;;  %v1272_v32 = vpack.c.bf16 %v379_v29, %v375_v27  ;;  %v378_v35 = vld [vmem:[%s2164_s3 + $0x3f0] sm:$0xff]  ;;  %v599_v38 = vld [vmem:[%s2166_s5 + $0x88] sm:$0xff] }
  0x41   :  { %v1210_v33 = vpack.c.bf16 %v376_v31, %v372_v30  ;;  %v1274_v36 = vpack.c.bf16 %v378_v35, %v374_v34  ;;  %v598_v37 = vld [vmem:[%s2166_s5 + $0x80] sm:$0xff]  ;;  %v631_v41 = vld [vmem:[%s2166_s5 + $0x188] sm:$0xff]  ;;  %v600_v52 = vld [vmem:[%s2166_s5 + $0x90] sm:$0xff] }
  0x42   :  { %1199 = vmatpush1.bf16.msra.mxu0 %v1198_v2  ;;  %v630_v39 = vld [vmem:[%s2166_s5 + $0x180] sm:$0xff]  ;;  %v1276_v40 = vpack.c.bf16 %v599_v38, %v598_v37  ;;  %v583_v46 = vld [vmem:[%s2166_s5 + $0x8] sm:$0xff]  ;;  %v601_v55 = vld [vmem:[%s2166_s5 + $0x98] sm:$0xff] }
  0x43   :  { %1263 = vmatpush1.bf16.msra.mxu1 %v1262_v3  ;;  %1201 = vmatprep.subr.bf16.mxu0 %v1200_v4  ;;  %v1308_v42 = vpack.c.bf16 %v631_v41, %v630_v39  ;;  %v582_v45 = vld [vmem:[%s2166_s5] sm:$0xff]  ;;  %v615_v51 = vld [vmem:[%s2166_s5 + $0x108] sm:$0xff]  ;;  %v632_v56 = vld [vmem:[%s2166_s5 + $0x190] sm:$0xff]  ;;  %v1280_v3 = vpack.c.bf16 %v601_v55, %v600_v52 }
  0x44   :  { %1265 = vmatprep.subr.bf16.mxu1 %v1264_v9  ;;  %v614_v50 = vld [vmem:[%s2166_s5 + $0x100] sm:$0xff]  ;;  %v633_v57 = vld [vmem:[%s2166_s5 + $0x198] sm:$0xff]  ;;  %v1278_v61 = vpack.c.bf16 %v583_v46, %v582_v45  ;;  %v584_v5 = vld [vmem:[%s2166_s5 + $0x10] sm:$0xff] }
  0x45   :  { %v1310_v62 = vpack.c.bf16 %v615_v51, %v614_v50  ;;  %v1312_v4 = vpack.c.bf16 %v633_v57, %v632_v56  ;;  %v585_v6 = vld [vmem:[%s2166_s5 + $0x18] sm:$0xff]  ;;  %v616_v11 = vld [vmem:[%s2166_s5 + $0x110] sm:$0xff]  ;;  %v602_v13 = vld [vmem:[%s2166_s5 + $0xa0] sm:$0xff] }
  0x46   :  { %1203 = vmatpush1.bf16.msra.mxu0 %v1202_v15  ;;  %v617_v12 = vld [vmem:[%s2166_s5 + $0x118] sm:$0xff]  ;;  %v603_v14 = vld [vmem:[%s2166_s5 + $0xa8] sm:$0xff]  ;;  %v634_v15 = vld [vmem:[%s2166_s5 + $0x1a0] sm:$0xff]  ;;  %v1282_v20 = vpack.c.bf16 %v585_v6, %v584_v5 }
  0x47   :  { %1267 = vmatpush1.bf16.msra.mxu1 %v1266_v16  ;;  %1205 = vmatprep.subr.bf16.mxu0 %v1204_v17  ;;  %v635_v16 = vld [vmem:[%s2166_s5 + $0x1a8] sm:$0xff]  ;;  %v1314_v21 = vpack.c.bf16 %v617_v12, %v616_v11  ;;  %v1284_v26 = vpack.c.bf16 %v603_v14, %v602_v13  ;;  %v604_v30 = vld [vmem:[%s2166_s5 + $0xb0] sm:$0xff]  ;;  %v605_v31 = vld [vmem:[%s2166_s5 + $0xb8] sm:$0xff] }
  0x48   :  { %1269 = vmatprep.subr.bf16.mxu1 %v1268_v18  ;;  %v587_v23 = vld [vmem:[%s2166_s5 + $0x28] sm:$0xff]  ;;  %v1316_v27 = vpack.c.bf16 %v635_v16, %v634_v15  ;;  %v588_v38 = vld [vmem:[%s2166_s5 + $0x30] sm:$0xff]  ;;  %v589_v39 = vld [vmem:[%s2166_s5 + $0x38] sm:$0xff]  ;;  %v1288_v41 = vpack.c.bf16 %v605_v31, %v604_v30 }
  0x49   :  { %v619_v29 = vld [vmem:[%s2166_s5 + $0x128] sm:$0xff]  ;;  %v606_v45 = vld [vmem:[%s2166_s5 + $0xc0] sm:$0xff]  ;;  %v1290_v50 = vpack.c.bf16 %v589_v39, %v588_v38  ;;  %v625_v5 = vld [vmem:[%s2166_s5 + $0x158] sm:$0xff] }
  0x4a   :  { %1207 = vmatpush1.bf16.msra.mxu0 %v1206_v22  ;;  %v586_v22 = vld [vmem:[%s2166_s5 + $0x20] sm:$0xff]  ;;  %v607_v46 = vld [vmem:[%s2166_s5 + $0xc8] sm:$0xff]  ;;  %v628_v30 = vld [vmem:[%s2166_s5 + $0x170] sm:$0xff] }
  0x4b   :  { %1271 = vmatpush1.bf16.msra.mxu1 %v1270_v24  ;;  %1209 = vmatprep.subr.bf16.mxu0 %v1208_v28  ;;  %v618_v28 = vld [vmem:[%s2166_s5 + $0x120] sm:$0xff]  ;;  %v623_v57 = vld [vmem:[%s2166_s5 + $0x148] sm:$0xff]  ;;  %v629_v31 = vld [vmem:[%s2166_s5 + $0x178] sm:$0xff] }
  0x4c   :  { %1273 = vmatprep.subr.bf16.mxu1 %v1272_v32  ;;  %v636_v32 = vld [vmem:[%s2166_s5 + $0x1b0] sm:$0xff]  ;;  %v1318_v37 = vpack.c.bf16 %v619_v29, %v618_v28  ;;  %v590_v52 = vld [vmem:[%s2166_s5 + $0x40] sm:$0xff]  ;;  %v595_v16 = vld [vmem:[%s2166_s5 + $0x68] sm:$0xff] }
  0x4d   :  { %v622_v56 = vld [vmem:[%s2166_s5 + $0x140] sm:$0xff]  ;;  %v597_v28 = vld [vmem:[%s2166_s5 + $0x78] sm:$0xff]  ;;  %v560_v38 = vld [vmem:[%s2165_s4 + $0x10] sm:$0xff] }
  0x4e   :  { %1211 = vmatpush1.bf16.msra.mxu0 %v1210_v33  ;;  %v637_v33 = vld [vmem:[%s2166_s5 + $0x1b8] sm:$0xff]  ;;  %v610_v6 = vld [vmem:[%s2166_s5 + $0xe0] sm:$0xff] }
  0x4f   :  { %1275 = vmatpush1.bf16.msra.mxu1 %v1274_v36  ;;  %1277 = vmatprep.subr.bf16.mxu0 %v1276_v40  ;;  %v1286_v36 = vpack.c.bf16 %v587_v23, %v586_v22  ;;  %v594_v13 = vld [vmem:[%s2166_s5 + $0x60] sm:$0xff]  ;;  %v613_v22 = vld [vmem:[%s2166_s5 + $0xf8] sm:$0xff]  ;;  %v644_v23 = vld [vmem:[%s2166_s5 + $0x1f0] sm:$0xff] }
  0x50   :  { %1309 = vmatprep.subr.bf16.mxu1 %v1308_v42  ;;  %v1320_v42 = vpack.c.bf16 %v637_v33, %v636_v32  ;;  %v1338_v32 = vpack.c.bf16 %v629_v31, %v628_v30  ;;  %v559_v33 = vld [vmem:[%s2165_s4 + $0x8] sm:$0xff] }
  0x88   :  { %v63_v43 = vpop.permute.xlu0 %62 }
  0x8c   :  { %v68_v58 = vpop.permute.xlu0 %67 }
  0xe2   :  { %v156_v44 = vpop.f32.mrb[0].mxu0 }
  0xe3   :  { %v157_v47 = vadd.f32 %v156_v44, %v63_v43  ;;  %v233_v48 = vpop.f32.mrb[0].mxu1  ;;  %v158_v49 = vpop.f32.mrb[1].mxu0  ;;  %v621_v44 = vld [vmem:[%s2166_s5 + $0x138] sm:$0xff] }
  0xe4   :  { %v159_v53 = vadd.f32 %v158_v49, %v63_v43  ;;  %v235_v54 = vpop.f32.mrb[1].mxu1  ;;  %v234_v18 = vadd.f32 %v233_v48, %v63_v43  ;;  %v639_v48 = vld [vmem:[%s2166_s5 + $0x1c8] sm:$0xff] }
  0xe5   :  { %v244_v63 = vmax.f32 %v157_v47, 0.0  ;;  %v236_v8 = vadd.f32 %v235_v54, %v63_v43  ;;  %v620_v43 = vld [vmem:[%s2166_s5 + $0x130] sm:$0xff]  ;;  %v638_v47 = vld [vmem:[%s2166_s5 + $0x1c0] sm:$0xff]  ;;  %v1292_v54 = vpack.c.bf16 %v607_v46, %v606_v45  ;;  %v563_v45 = vld [vmem:[%s2165_s4 + $0x28] sm:$0xff] }
  0xe6   :  { %v245_v59 = vmax.f32 %v159_v53, 0.0  ;;  %v162_v60 = vpop.f32.mrb[2].mxu0  ;;  %v246_v34 = vmax.f32 %v234_v18, 0.0  ;;  %v1322_v51 = vpack.c.bf16 %v621_v44, %v620_v43  ;;  %v591_v53 = vld [vmem:[%s2166_s5 + $0x48] sm:$0xff]  ;;  %v1324_v55 = vpack.c.bf16 %v639_v48, %v638_v47  ;;  %v565_v46 = vld [vmem:[%s2165_s4 + $0x38] sm:$0xff]  ;;  %v562_v48 = vld [vmem:[%s2165_s4 + $0x20] sm:$0xff] }
  0xe7   :  { %v163_v0 = vadd.f32 %v162_v60, %v68_v58  ;;  %v239_v1 = vpop.f32.mrb[2].mxu1  ;;  %v164_v2 = vpop.f32.mrb[3].mxu0  ;;  %v247_v24 = vmax.f32 %v236_v8, 0.0  ;;  %v640_v60 = vld [vmem:[%s2166_s5 + $0x1d0] sm:$0xff]  ;;  %v611_v8 = vld [vmem:[%s2166_s5 + $0xe8] sm:$0xff] }
  0xe8   :  { %v165_v9 = vadd.f32 %v164_v2, %v68_v58  ;;  %v241_v10 = vpop.f32.mrb[3].mxu1  ;;  %444 = vmatprep.mubr.f32.mxu0 %v245_v59  ;;  %533 = vmatprep.mubr.f32.mxu1 %v245_v59  ;;  %v240_v35 = vadd.f32 %v239_v1, %v68_v58  ;;  %v609_v59 = vld [vmem:[%s2166_s5 + $0xd8] sm:$0xff]  ;;  %v1300_v14 = vpack.c.bf16 %v611_v8, %v610_v6  ;;  %v627_v18 = vld [vmem:[%s2166_s5 + $0x168] sm:$0xff] }
  0xe9   :  { %445 = vmatmul.mubr.f32.vlgmr.msra.gmra.mrb[4].mxu0 %v244_v63  ;;  %534 = vmatmul.mubr.f32.vlgmr.msra.gmra.mrb[4].mxu1 %v244_v63  ;;  %v248_v19 = vmax.f32 %v163_v0, 0.0  ;;  %v242_v25 = vadd.f32 %v241_v10, %v68_v58  ;;  %v608_v58 = vld [vmem:[%s2166_s5 + $0xd0] sm:$0xff]  ;;  %v1326_v63 = vpack.c.bf16 %v623_v57, %v622_v56  ;;  %v593_v1 = vld [vmem:[%s2166_s5 + $0x58] sm:$0xff]  ;;  %v643_v10 = vld [vmem:[%s2166_s5 + $0x1e8] sm:$0xff] }
  0xea   :  { %v249_v17 = vmax.f32 %v165_v9, 0.0  ;;  %1279 = vmatpush3.bf16.msra.mxu0 %v1278_v61  ;;  %1311 = vmatpush3.bf16.msra.mxu1 %v1310_v62  ;;  %v250_v49 = vmax.f32 %v240_v35, 0.0  ;;  %v641_v61 = vld [vmem:[%s2166_s5 + $0x1d8] sm:$0xff]  ;;  %v1294_v62 = vpack.c.bf16 %v591_v53, %v590_v52  ;;  %v592_v0 = vld [vmem:[%s2166_s5 + $0x50] sm:$0xff]  ;;  %v1296_v2 = vpack.c.bf16 %v609_v59, %v608_v58  ;;  %v642_v9 = vld [vmem:[%s2166_s5 + $0x1e0] sm:$0xff] }
  0xeb   :  { %1281 = vmatprep.subr.bf16.mxu0 %v1280_v3  ;;  %1313 = vmatprep.subr.bf16.mxu1 %v1312_v4  ;;  %v251_v40 = vmax.f32 %v242_v25, 0.0  ;;  %v1328_v3 = vpack.c.bf16 %v641_v61, %v640_v60  ;;  %v624_v4 = vld [vmem:[%s2166_s5 + $0x150] sm:$0xff]  ;;  %v1298_v11 = vpack.c.bf16 %v593_v1, %v592_v0  ;;  %v1332_v15 = vpack.c.bf16 %v643_v10, %v642_v9  ;;  %v645_v25 = vld [vmem:[%s2166_s5 + $0x1f8] sm:$0xff] }
  0xec   :  { %450 = vmatprep.mubr.f32.mxu0 %v249_v17  ;;  %539 = vmatprep.mubr.f32.mxu1 %v249_v17  ;;  %v1330_v12 = vpack.c.bf16 %v625_v5, %v624_v4  ;;  %v626_v17 = vld [vmem:[%s2166_s5 + $0x160] sm:$0xff]  ;;  %v1384_v10 = vmov 0.0|0.0  }
  0xed   :  { %451 = vmatmul.mubr.f32.gmra.mrb[6].mxu0 %v248_v19  ;;  %540 = vmatmul.mubr.f32.gmra.mrb[6].mxu1 %v248_v19  ;;  %v1302_v19 = vpack.c.bf16 %v595_v16, %v594_v13  ;;  %v901_v13 = vld [vmem:[%s2169_s8 + $0x10] sm:$0xff] }
  0xee   :  { %456 = vmatprep.mubr.f32.mxu0 %v247_v24  ;;  %545 = vmatprep.mubr.f32.mxu1 %v247_v24 }
  0xef   :  { %1283 = vmatpush3.bf16.msra.mxu0 %v1282_v20  ;;  %1315 = vmatpush3.bf16.msra.mxu1 %v1314_v21  ;;  %v1334_v20 = vpack.c.bf16 %v627_v18, %v626_v17  ;;  %v612_v21 = vld [vmem:[%s2166_s5 + $0xf0] sm:$0xff] }
  0xf0   :  { %1285 = vmatprep.subr.bf16.mxu0 %v1284_v26  ;;  %1317 = vmatprep.subr.bf16.mxu1 %v1316_v27  ;;  %v1304_v24 = vpack.c.bf16 %v613_v22, %v612_v21  ;;  %v596_v26 = vld [vmem:[%s2166_s5 + $0x70] sm:$0xff]  ;;  %v1336_v27 = vpack.c.bf16 %v645_v25, %v644_v23 }
  0xf1   :  { %457 = vmatmul.mubr.f32.gmra.mrb[8].mxu0 %v246_v34  ;;  %546 = vmatmul.mubr.f32.gmra.mrb[8].mxu1 %v246_v34  ;;  %v1306_v29 = vpack.c.bf16 %v597_v28, %v596_v26  ;;  %v561_v34 = vld [vmem:[%s2165_s4 + $0x18] sm:$0xff] }
  0xf2   :  { %462 = vmatprep.mubr.f32.mxu0 %v251_v40  ;;  %551 = vmatprep.mubr.f32.mxu1 %v251_v40 }
  0xf3   :  { %1287 = vmatpush3.bf16.msra.mxu0 %v1286_v36  ;;  %1319 = vmatpush3.bf16.msra.mxu1 %v1318_v37  ;;  %v558_v36 = vld [vmem:[%s2165_s4] sm:$0xff] }
  0xf4   :  { %1289 = vmatprep.subr.bf16.mxu0 %v1288_v41  ;;  %1321 = vmatprep.subr.bf16.mxu1 %v1320_v42 }
  0xf5   :  { %463 = vmatmul.mubr.f32.gmra.mrb[10].mxu0 %v250_v49  ;;  %552 = vmatmul.mubr.f32.gmra.mrb[10].mxu1 %v250_v49 }
  0xf7   :  { %1291 = vmatpush3.bf16.msra.mxu0 %v1290_v50  ;;  %1323 = vmatpush3.bf16.msra.mxu1 %v1322_v51  ;;  %v564_v50 = vld [vmem:[%s2165_s4 + $0x30] sm:$0xff] }
  0xf8   :  { %1293 = vmatprep.subr.bf16.mxu0 %v1292_v54  ;;  %1325 = vmatprep.subr.bf16.mxu1 %v1324_v55 }
  0xfb   :  { %1295 = vmatpush3.bf16.msra.mxu0 %v1294_v62  ;;  %1327 = vmatpush3.bf16.msra.mxu1 %v1326_v63 }
  0xfc   :  { %1297 = vmatprep.subr.bf16.mxu0 %v1296_v2  ;;  %1329 = vmatprep.subr.bf16.mxu1 %v1328_v3 }
  0xff   :  { %1299 = vmatpush3.bf16.msra.mxu0 %v1298_v11  ;;  %1331 = vmatpush3.bf16.msra.mxu1 %v1330_v12  ;;  %v899_v11 = vld [vmem:[%s2169_s8] sm:$0xff]  ;;  %v900_v12 = vld [vmem:[%s2169_s8 + $0x8] sm:$0xff] }
 0x100   :  { %1301 = vmatprep.subr.bf16.mxu0 %v1300_v14  ;;  %1333 = vmatprep.subr.bf16.mxu1 %v1332_v15  ;;  %v1347_v14 = vpack.c.bf16 %v900_v12, %v899_v11  ;;  %v902_v15 = vld [vmem:[%s2169_s8 + $0x18] sm:$0xff] }
 0x101   :  { %v1350_v16 = vpack.c.bf16 %v902_v15, %v901_v13 }
 0x103   :  { %1303 = vmatpush3.bf16.msra.mxu0 %v1302_v19  ;;  %1335 = vmatpush3.bf16.msra.mxu1 %v1334_v20 }
 0x104   :  { %1305 = vmatprep.subr.bf16.mxu0 %v1304_v24  ;;  %1337 = vmatprep.subr.bf16.mxu1 %v1336_v27 }
 0x107   :  { %1307 = vmatpush3.bf16.msra.mxu0 %v1306_v29  ;;  %1339 = vmatpush3.bf16.msra.mxu1 %v1338_v32 }
 0x108   :  { %1340 = vmatprep.subr.bf16.mxu0 %v1384_v10  ;;  %1346 = vmatprep.subr.bf16.mxu1 %v1384_v10 }
 0x1bc   :  { %v446_v35 = vpop.f32.mrb[4].mxu0  ;;  %v535_v37 = vpop.f32.mrb[4].mxu1 }
 0x1bd   :  { %v448_v39 = vpop.f32.mrb[5].mxu0  ;;  %v537_v40 = vpop.f32.mrb[5].mxu1  ;;  %v566_v43 = vmul.f32 %v558_v36, %v446_v35  ;;  %v568_v44 = vmul.f32 %v560_v38, %v535_v37 }
 0x1be   :  { %v567_v41 = vmul.f32 %v559_v33, %v448_v39  ;;  %v569_v42 = vmul.f32 %v561_v34, %v537_v40 }
 0x1c0   :  { %v452_v47 = vpop.f32.mrb[6].mxu0  ;;  %v541_v49 = vpop.f32.mrb[6].mxu1  ;;  %710 = vmatprep.mubr.f32.mxu0 %v567_v41  ;;  %795 = vmatprep.mubr.f32.mxu1 %v569_v42 }
 0x1c1   :  { %v454_v51 = vpop.f32.mrb[7].mxu0  ;;  %v543_v52 = vpop.f32.mrb[7].mxu1  ;;  %711 = vmatmul.mubr.f32.vlgmr.msra.gmra.mrb[12].mxu0 %v566_v43  ;;  %796 = vmatmul.mubr.f32.vlgmr.msra.gmra.mrb[12].mxu1 %v568_v44  ;;  %v570_v55 = vmul.f32 %v562_v48, %v452_v47  ;;  %v572_v56 = vmul.f32 %v564_v50, %v541_v49  ;;  %v1008_v47 = vld [vmem:[%s2168_s7] ss:$0 sm:$0xff] }
 0x1c2   :  { %v571_v53 = vmul.f32 %v563_v45, %v454_v51  ;;  %v573_v54 = vmul.f32 %v565_v46, %v543_v52  ;;  %1348 = vmatpush3.bf16.msra.mxu1 %v1347_v14  ;;  %v1010_v52 = vld [vmem:[%s2170_s9] ss:$0 sm:$0xff] }
 0x1c3   :  { %1349 = vmatprep.subr.bf16.mxu1 %v1384_v10 }
 0x1c4   :  { %v458_v57 = vpop.f32.mrb[8].mxu0  ;;  %v547_v58 = vpop.f32.mrb[8].mxu1  ;;  %715 = vmatprep.mubr.f32.mxu0 %v571_v53  ;;  %800 = vmatprep.mubr.f32.mxu1 %v573_v54 }
 0x1c5   :  { %v460_v59 = vpop.f32.mrb[9].mxu0  ;;  %v549_v60 = vpop.f32.mrb[9].mxu1  ;;  %716 = vmatmul.mubr.f32.gmra.mrb[14].mxu0 %v570_v55  ;;  %801 = vmatmul.mubr.f32.gmra.mrb[14].mxu1 %v572_v56  ;;  %v574_v63 = vmul.f32 %v558_v36, %v458_v57  ;;  %v576_v0 = vmul.f32 %v560_v38, %v547_v58 }
 0x1c6   :  { %v575_v61 = vmul.f32 %v559_v33, %v460_v59  ;;  %v577_v62 = vmul.f32 %v561_v34, %v549_v60  ;;  %1351 = vmatpush3.bf16.msra.mxu1 %v1350_v16 }
 0x1c8   :  { %v464_v1 = vpop.f32.mrb[10].mxu0  ;;  %v553_v2 = vpop.f32.mrb[10].mxu1  ;;  %720 = vmatprep.mubr.f32.mxu0 %v575_v61  ;;  %805 = vmatprep.mubr.f32.mxu1 %v577_v62 }
 0x1c9   :  { %v466_v3 = vpop.f32.mrb[11].mxu0  ;;  %v555_v4 = vpop.f32.mrb[11].mxu1  ;;  %721 = vmatmul.mubr.f32.gmra.mrb[16].mxu0 %v574_v63  ;;  %806 = vmatmul.mubr.f32.gmra.mrb[16].mxu1 %v576_v0  ;;  %v578_v8 = vmul.f32 %v562_v48, %v464_v1  ;;  %v580_v9 = vmul.f32 %v564_v50, %v553_v2 }
 0x1ca   :  { %v579_v5 = vmul.f32 %v563_v45, %v466_v3  ;;  %v581_v6 = vmul.f32 %v565_v46, %v555_v4  ;;  %v816_v46 = vld [vmem:[%s2167_s6] sm:$0x3]  ;;  %s1358_s6 = scalar_lea.vmem %s993_s13, 32 }
 0x1cb   :  { %p1359_p0 = scmp.ne.s32.totalorder %s993_s13, %s1358_s6  ;;  %p1364_p2 = scmp.lt.s32.totalorder %s1358_s6, %s1358_s6 }
 0x1cc   :  { %725 = vmatprep.mubr.f32.mxu0 %v579_v5  ;;  %810 = vmatprep.mubr.f32.mxu1 %v581_v6 }
 0x1cd   :  { %726 = vmatmul.mubr.f32.gmra.mrb[18].mxu0 %v578_v8  ;;  %811 = vmatmul.mubr.f32.gmra.mrb[18].mxu1 %v580_v9  ;;  %p1365_p3 = por %p1364_p2, %p1363_p1 }
 0x1ce   :  { %1118 = vmatprep.mubr.msk.f32.mxu0 %vm1385_vm2, %v1382_v7  ;;  %1129 = vmatprep.mubr.msk.f32.mxu1 %vm1385_vm2, %v1382_v7 }
 0x1cf   :  { %p1366_p4 = pnand %p1365_p3, %p1359_p0 }
 0x294   :  { %v1044_v7 = vpop.f32.mrb[12].mxu0  ;;  %v1088_v17 = vpop.f32.mrb[12].mxu1 }
 0x295   :  { %v1045_v18 = vpop.f32.mrb[13].mxu0  ;;  %v1089_v19 = vpop.f32.mrb[13].mxu1 }
 0x296   :  { %v1046_v20 = vadd.f32 %v1045_v18, %v1044_v7  ;;  %v1090_v21 = vadd.f32 %v1089_v19, %v1088_v17 }
 0x298   :  { %v798_v22 = vadd.f32 %v1090_v21, %v1046_v20  ;;  %v1047_v23 = vpop.f32.mrb[14].mxu0  ;;  %v1091_v24 = vpop.f32.mrb[14].mxu1 }
 0x299   :  { %v1048_v25 = vpop.f32.mrb[15].mxu0  ;;  %v1092_v26 = vpop.f32.mrb[15].mxu1 }
 0x29a   :  { %v1049_v27 = vadd.f32 %v1048_v25, %v1047_v23  ;;  %v1093_v28 = vadd.f32 %v1092_v26, %v1091_v24 }
 0x29c   :  { %v803_v29 = vadd.f32 %v1093_v28, %v1049_v27  ;;  %v1050_v30 = vpop.f32.mrb[16].mxu0  ;;  %v1094_v31 = vpop.f32.mrb[16].mxu1 }
 0x29d   :  { %v1051_v32 = vpop.f32.mrb[17].mxu0  ;;  %v1095_v33 = vpop.f32.mrb[17].mxu1 }
 0x29e   :  { %v1341_v34 = vpack.c.bf16 %v803_v29, %v798_v22  ;;  %v1052_v35 = vadd.f32 %v1051_v32, %v1050_v30  ;;  %v1096_v36 = vadd.f32 %v1095_v33, %v1094_v31 }
 0x2a0   :  { %v808_v37 = vadd.f32 %v1096_v36, %v1052_v35  ;;  %v1053_v38 = vpop.f32.mrb[18].mxu0  ;;  %v1097_v39 = vpop.f32.mrb[18].mxu1  ;;  %1342 = vmatpush3.bf16.msra.mxu0 %v1341_v34 }
 0x2a1   :  { %v1054_v40 = vpop.f32.mrb[19].mxu0  ;;  %v1098_v41 = vpop.f32.mrb[19].mxu1  ;;  %1343 = vmatprep.subr.bf16.mxu0 %v1384_v10 }
 0x2a2   :  { %v1055_v42 = vadd.f32 %v1054_v40, %v1053_v38  ;;  %v1099_v43 = vadd.f32 %v1098_v41, %v1097_v39 }
 0x2a4   :  { %v813_v44 = vadd.f32 %v1099_v43, %v1055_v42 }
 0x2a6   :  { %v1344_v45 = vpack.c.bf16 %v813_v44, %v808_v37 }
 0x2a8   :  { %1345 = vmatpush3.bf16.msra.mxu0 %v1344_v45 }
 0x2ab   :  { %1119 = vmatmul.mubr.msk.f32.vlgmr.msra.gmra.mrb[20].mxu0 %vm824_vm3, %v816_v46 }
 0x37e   :  { %v894_v48 = vpop.f32.mrb[20].mxu0 }
 0x37f   :  { %v895_v49 = vadd.f32 %v1008_v47, %v894_v48  ;;  %v1120_v50 = vpop.f32.mrb[21].mxu0 }
 0x381   :  { %v898_v51 = vmax.f32 %v895_v49, 0.0 }
 0x383   :  { %1130 = vmatmul.mubr.msk.f32.vlgmr.msra.gmra.mrb[20].mxu1 %vm824_vm3, %v898_v51 }
 0x456   :  { %v979_v53 = vpop.f32.mrb[20].mxu1 }
 0x457   :  { %v980_v54 = vadd.f32 %v1010_v52, %v979_v53  ;;  %v1131_v55 = vpop.f32.mrb[21].mxu1 }
 0x459   :  { %v983_v56 = vmax.f32 %v980_v54, 0.0 }
 0x45b   :  { %985 = vst.msk [vmem:[#allocation2] sm:$0x3] %vm984_vm4, %v983_v56 }
 0x45c   :  { %1369 = shalt.err (!%p1366_p4)
}
 0x45d   :  { %s1370_s9 = scalar_lea.hbm %s2171_s10, 32 }
 0x45e   :  { %p1371_p5 = scmp.ne.s32.totalorder %s2171_s10, %s1370_s9  ;;  %p1374_p6 = scmp.lt.u32.totalorder %s1370_s9, %s2171_s10 }
 0x460   :  { %p1376_p7 = pnand %p1374_p6, %p1371_p5 }
 0x462   :  { %1379 = shalt.err (!%p1376_p7)
}
 0x463   :  { %995 = dma.vmem_to_hbm [thread:$0]  %s993_s13, 32, %s2171_s10, [#allocation3]  }
 0x464   :  { %1380 = dma.done.wait [#allocation3], 32  }
 0x465   :  { %1381 = vsyncadd [#allocation3], 4294967264 }
 0x466   :  { %999 = vsyncpa [#allocation3], 1 }

</bundles_post_ra>
